<compile_context>
chip_gen: v6e
topology: v6e:2x2x1
jax: 0.10.0
libtpu: 0.0.40
codegen_flags: <defaults>
</compile_context>

<pallas_src>
import functools

import jax
import jax.numpy as jnp
from jax.experimental import pallas as pl
from jax.experimental.pallas import tpu as pltpu


_N_CORES = 2                       # leading "parallel" grid axis (v7x megacore)
_VMEM_LIMIT = 48 * 1024 * 1024     # fits v5e/v6e (128 MiB) and v7x (64 MiB/TC)


def _round_up(x, m):
    return ((x + m - 1) // m) * m


def _make_kernel(rows, bt, n, compute_dtype):
    """Row-block kernel: accumulates sum((x @ relu(Wc)^T - x_next)^2) per core."""

    def kernel(x_ref, xn_ref, w_ref, out_ref, acc_ref):
        c = pl.program_id(0)               # core index (parallel axis)
        i = pl.program_id(1)               # row-block step (sequential reduction)
        nbh = pl.num_programs(1)
        step = c * nbh + i                 # global (unclamped) row-block index

        @pl.when(i == 0)
        def _init():
            acc_ref[...] = jnp.zeros_like(acc_ref)

        # Prediction block = x_block @ relu(Wc)^T  -- one MXU GEMM.  The weight
        # arrives pre-gated / pre-transposed / pre-cast from the wrapper; only
        # the cheap per-block cast of x happens here (targets stay f32).
        pred = jnp.dot(x_ref[...].astype(compute_dtype), w_ref[...],
                       preferred_element_type=jnp.float32)          # (bt, N) f32
        diff = pred - xn_ref[...]                                    # f32 targets

        # Mask rows whose global source index falls outside [0, rows): covers
        # partial tail blocks, the rolled wrap-around row and phantom grid steps.
        gid = jax.lax.broadcasted_iota(jnp.int32, (bt, n), 0) + step * bt
        dsq = jnp.where(gid < rows, diff * diff, 0.0)

        # Lane-shaped partial accumulator: sublane (axis=0) reduce per step;
        # the cross-lane reduce happens once in the finalize.
        acc_ref[...] += jnp.sum(dsq, axis=0, keepdims=True)

        @pl.when(i == nbh - 1)
        def _finalize():
            out_ref[...] = jnp.full(out_ref.shape, jnp.sum(acc_ref[...]),
                                    dtype=out_ref.dtype)

    return kernel


@functools.partial(jax.jit, static_argnames=("block_rows", "compute_dtype"))
def linear_base_forward(x, wc, *, block_rows=2048, compute_dtype=jnp.bfloat16):
    """Pallas implementation of Linear_base.forward -> (loss, l1)."""
    x = x.astype(jnp.float32)
    wc = wc.astype(jnp.float32)
    T, N = x.shape
    assert T >= 2, "need at least two time steps for the shifted MSE loss"
    rows = T - 1

    # Hoisted O(N^2) one-off work (previously re-executed every grid step):
    l1 = jnp.sum(jnp.abs(wc))                                    # = sum|Wc|
    w_gate = jnp.maximum(wc, 0.0).T.astype(compute_dtype)        # relu(Wc)^T

    # Target stream: x shifted by one row.  Keeping the full (T, N) shape lets
    # x and the targets share one blocking scheme (no pad / no slice of x
    # itself; the wrapped last row is masked in-kernel).
    xn = jnp.roll(x, shift=-1, axis=0)

    # ---- row-block size: largest multiple of 8 that fits the VMEM budget ----
    w_vmem = 2 * N * N * jnp.dtype(compute_dtype).itemsize   # double-buffered weight
    budget = _VMEM_LIMIT - (8 << 20)                         # headroom for misc
    # two f32 row streams, double-buffered: 2 * 2 * bt * N * 4 bytes
    bt_vmem = max(8, ((budget - w_vmem) // (16 * N)) // 8 * 8)
    # TODO(synk): for N >= ~2048 the resident (N,N) weight should be column-tiled
    # with an extra grid axis instead of relying on bt shrinking.
    if T >= 8:
        bt = min(_round_up(max(block_rows, 8), 8),
                 _round_up(rows, 8), (T // 8) * 8, bt_vmem)
        bt = max(bt, 8)
    else:
        bt = T                        # tiny-T fallback: single full-height block

    n_blocks = (rows + bt - 1) // bt                  # real row-block steps
    nbh = (n_blocks + _N_CORES - 1) // _N_CORES       # steps per core
    grid = (_N_CORES, nbh)
    max_blk = n_blocks - 1                            # clamp for phantom steps

    def row_map(c, i):
        return (jnp.minimum(c * nbh + i, max_blk), 0)

    kernel = _make_kernel(rows, bt, N, compute_dtype)

    partial = pl.pallas_call(
        kernel,
        out_shape=jax.ShapeDtypeStruct((_N_CORES * 8, 128), jnp.float32),
        grid=grid,
        in_specs=[
            pl.BlockSpec((bt, N), row_map),               # x        (sources)
            pl.BlockSpec((bt, N), row_map),               # x shifted (targets)
            pl.BlockSpec((N, N), lambda c, i: (0, 0)),    # relu(Wc)^T (resident)
        ],
        out_specs=pl.BlockSpec((8, 128), lambda c, i: (c, 0)),   # per-core partial
        scratch_shapes=[pltpu.VMEM((1, N), jnp.float32)],        # lane accumulator
        compiler_params=pltpu.CompilerParams(
            dimension_semantics=("parallel", "arbitrary"),
            vmem_limit_bytes=_VMEM_LIMIT,
        ),
    )(x, xn, w_gate)

    loss_sum = sum(partial[8 * c, 0] for c in range(_N_CORES))
    loss = loss_sum / float(rows * N)
    return loss, l1


def reference_forward(x, wc):
    """Pure-JAX transliteration of the PyTorch module (the spec)."""
    T, N = x.shape
    type_mat = jnp.eye(N, dtype=jnp.float32)
    weight = jnp.maximum(type_mat @ wc.T, 0.0)              # relu(causal_layer(eye))
    cl_output = x[:, None, :] * weight.T[None, :, :]        # (T, N, N)
    out = cl_output.sum(2)                                  # (T, N)
    loss = jnp.mean((out[:-1] - x[1:]) ** 2)
    l1 = jnp.sum(jnp.abs(wc))
    return loss, l1


if __name__ == "__main__":
    key = jax.random.PRNGKey(0)

    def make_case(k, T, N):
        kx, kw = jax.random.split(k)
        x = jax.random.normal(kx, (T, N), jnp.float32)
        bound = 1.0 / jnp.sqrt(N)        # nn.Linear default init range
        wc = jax.random.uniform(kw, (N, N), jnp.float32, -bound, bound)
        return x, wc

    # Case 1: tiny single-block grid, exact f32 compute path.
    key, k1 = jax.random.split(key)
    x1, wc1 = make_case(k1, 8, 8)
    loss1, l11 = jax.block_until_ready(
        linear_base_forward(x1, wc1, compute_dtype=jnp.float32))
    rloss1, rl11 = reference_forward(x1, wc1)
    assert jnp.allclose(loss1, rloss1, rtol=1e-4, atol=1e-4), (loss1, rloss1)
    assert jnp.allclose(l11, rl11, rtol=1e-4, atol=1e-4), (l11, rl11)

    # Case 2: multi-block grid with an odd block count (T-1 = 40 rows,
    # block_rows=8 -> 5 real steps split over the 2-wide parallel axis plus one
    # clamped phantom step), exercising init / accumulate / finalize + masking.
    key, k2 = jax.random.split(key)
    x2, wc2 = make_case(k2, 41, 8)
    loss2, l12 = jax.block_until_ready(
        linear_base_forward(x2, wc2, block_rows=8, compute_dtype=jnp.float32))
    rloss2, rl12 = reference_forward(x2, wc2)
    assert jnp.allclose(loss2, rloss2, rtol=1e-4, atol=1e-4), (loss2, rloss2)
    assert jnp.allclose(l12, rl12, rtol=1e-4, atol=1e-4), (l12, rl12)

    # Case 3: lane-width 128, default bf16 GEMM path (f32 targets/accumulation);
    # compared against the f32 reference with a bf16-appropriate tolerance.
    key, k3 = jax.random.split(key)
    x3, wc3 = make_case(k3, 257, 128)
    loss3, l13 = jax.block_until_ready(linear_base_forward(x3, wc3))
    rloss3, rl13 = reference_forward(x3, wc3)
    assert jnp.allclose(loss3, rloss3, rtol=2e-2, atol=1e-3), (loss3, rloss3)
    assert jnp.allclose(l13, rl13, rtol=1e-4, atol=1e-4), (l13, rl13)

    # TODO(synk): get_adj() (returns relu(Wc.T) detached) is a host-side helper,
    # not part of forward; compute it with plain jnp if needed.
    print("KERNEL_OK")
</pallas_src>

<mosaic_0001>
module attributes {stable_mosaic.version = 11 : i64} {
  func.func @kernel(%arg0: i32, %arg1: i32, %arg2: memref<8x8xf32, #tpu.memory_space<vmem>>, %arg3: memref<8x8xf32, #tpu.memory_space<vmem>>, %arg4: memref<8x8xf32, #tpu.memory_space<vmem>>, %arg5: memref<8x128xf32, #tpu.memory_space<vmem>>, %arg6: memref<1x8xf32, #tpu.memory_space<vmem>>) attributes {dimension_semantics = [#tpu.dimension_semantics<parallel>, #tpu.dimension_semantics<arbitrary>], iteration_bounds = array<i64: 2, 1>, scalar_prefetch = 0 : i64, scratch_operands = 1 : i64, tpu.core_type = #tpu.core_type<tc>, window_params = [{transform_indices = @transform_0, window_bounds = array<i64: 8, 8>}, {transform_indices = @transform_1, window_bounds = array<i64: 8, 8>}, {pipeline_mode = #tpu.pipeline_mode<synchronous>, transform_indices = @transform_2, window_bounds = array<i64: 8, 8>}, {transform_indices = @transform_3, window_bounds = array<i64: 8, 128>}]} {
    %c1_i32 = arith.constant 1 : i32
    %0 = arith.muli %arg0, %c1_i32 : i32
    %1 = arith.addi %0, %arg1 : i32
    %c0_i32 = arith.constant 0 : i32
    %2 = arith.cmpi eq, %arg1, %c0_i32 : i32
    %3 = arith.extui %2 : i1 to i32
    %c0_i32_0 = arith.constant 0 : i32
    %4 = arith.cmpi ne, %3, %c0_i32_0 : i32
    scf.if %4 {
      %cst_14 = arith.constant 0.000000e+00 : f32
      %27 = vector.broadcast %cst_14 : f32 to vector<1x8xf32>
      %c0_15 = arith.constant 0 : index
      %c0_16 = arith.constant 0 : index
      %28 = vector.load %arg6[%c0_15, %c0_16] : memref<1x8xf32, #tpu.memory_space<vmem>>, vector<1x8xf32>
      tpu.vector_store %arg6[%c0_15, %c0_16], %27 {strides = array<i32>} : memref<1x8xf32, #tpu.memory_space<vmem>>, vector<1x8xf32>,
    } else {
    }
    %c0 = arith.constant 0 : index
    %c0_1 = arith.constant 0 : index
    %5 = vector.load %arg2[%c0, %c0_1] : memref<8x8xf32, #tpu.memory_space<vmem>>, vector<8x8xf32>
    %c0_2 = arith.constant 0 : index
    %c0_3 = arith.constant 0 : index
    %6 = vector.load %arg4[%c0_2, %c0_3] : memref<8x8xf32, #tpu.memory_space<vmem>>, vector<8x8xf32>
    %cst = arith.constant dense<0.000000e+00> : vector<8x8xf32>
    %7 = tpu.matmul %5, %6, %cst {dimension_numbers = #tpu.dot_dimension_numbers<[1], [0], [0], [1], [0, 0, 1, 1], [], []>} : vector<8x8xf32>, vector<8x8xf32>, vector<8x8xf32> -> vector<8x8xf32>
    %c0_4 = arith.constant 0 : index
    %c0_5 = arith.constant 0 : index
    %8 = vector.load %arg3[%c0_4, %c0_5] : memref<8x8xf32, #tpu.memory_space<vmem>>, vector<8x8xf32>
    %9 = arith.subf %7, %8 : vector<8x8xf32>
    %10 = tpu.iota {dimensions = array<i32: 0>} : vector<8x8xi32>
    %c8_i32 = arith.constant 8 : i32
    %11 = arith.muli %1, %c8_i32 : i32
    %12 = vector.broadcast %11 : i32 to vector<8x8xi32>
    %13 = arith.addi %10, %12 : vector<8x8xi32>
    %c7_i32 = arith.constant 7 : i32
    %14 = vector.broadcast %c7_i32 : i32 to vector<8x8xi32>
    %15 = arith.cmpi slt, %13, %14 : vector<8x8xi32>
    %16 = arith.mulf %9, %9 : vector<8x8xf32>
    %cst_6 = arith.constant 0.000000e+00 : f32
    %17 = vector.broadcast %cst_6 : f32 to vector<8x8xf32>
    %18 = arith.select %15, %16, %17 : vector<8x8xi1>, vector<8x8xf32>
    %c0_7 = arith.constant 0 : index
    %c0_8 = arith.constant 0 : index
    %19 = vector.load %arg6[%c0_7, %c0_8] : memref<1x8xf32, #tpu.memory_space<vmem>>, vector<1x8xf32>
    %cst_9 = arith.constant dense<0.000000e+00> : vector<8xf32>
    %20 = vector.multi_reduction <add>, %18, %cst_9 [0] : vector<8x8xf32> to vector<8xf32>
    %21 = vector.shape_cast %20 : vector<8xf32> to vector<1x8xf32>
    %22 = arith.addf %19, %21 : vector<1x8xf32>
    %c0_10 = arith.constant 0 : index
    %c0_11 = arith.constant 0 : index
    %23 = vector.load %arg6[%c0_10, %c0_11] : memref<1x8xf32, #tpu.memory_space<vmem>>, vector<1x8xf32>
    tpu.vector_store %arg6[%c0_10, %c0_11], %22 {strides = array<i32>} : memref<1x8xf32, #tpu.memory_space<vmem>>, vector<1x8xf32>,
    %c0_i32_12 = arith.constant 0 : i32
    %24 = arith.cmpi eq, %arg1, %c0_i32_12 : i32
    %25 = arith.extui %24 : i1 to i32
    %c0_i32_13 = arith.constant 0 : i32
    %26 = arith.cmpi ne, %25, %c0_i32_13 : i32
    scf.if %26 {
      %c0_14 = arith.constant 0 : index
      %c0_15 = arith.constant 0 : index
      %27 = vector.load %arg6[%c0_14, %c0_15] : memref<1x8xf32, #tpu.memory_space<vmem>>, vector<1x8xf32>
      %28 = vector.shape_cast %27 : vector<1x8xf32> to vector<1x1x8xf32>
      %cst_16 = arith.constant dense<0.000000e+00> : vector<1xf32>
      %29 = vector.multi_reduction <add>, %28, %cst_16 [1, 2] : vector<1x1x8xf32> to vector<1xf32>
      %30 = vector.shape_cast %29 : vector<1xf32> to vector<1x1x1xf32>
      %31 = vector.extract %30[0, 0, 0] : f32 from vector<1x1x1xf32>
      %32 = vector.broadcast %31 : f32 to vector<8x128xf32>
      %c0_17 = arith.constant 0 : index
      %c0_18 = arith.constant 0 : index
      %33 = vector.load %arg5[%c0_17, %c0_18] : memref<8x128xf32, #tpu.memory_space<vmem>>, vector<8x128xf32>
      tpu.vector_store %arg5[%c0_17, %c0_18], %32 {strides = array<i32>} : memref<8x128xf32, #tpu.memory_space<vmem>>, vector<8x128xf32>,
    } else {
    }
    return
  }
  func.func @transform_0(%arg0: i32, %arg1: i32) -> (i32, i32) {
    %c1_i32 = arith.constant 1 : i32
    %0 = arith.muli %arg0, %c1_i32 : i32
    %1 = arith.addi %0, %arg1 : i32
    %c0_i32 = arith.constant 0 : i32
    %2 = arith.minsi %1, %c0_i32 : i32
    %c0_i32_0 = arith.constant 0 : i32
    %c0_i32_1 = arith.constant 0 : i32
    return %2, %c0_i32_0 : i32, i32
  }
  func.func @transform_1(%arg0: i32, %arg1: i32) -> (i32, i32) {
    %c1_i32 = arith.constant 1 : i32
    %0 = arith.muli %arg0, %c1_i32 : i32
    %1 = arith.addi %0, %arg1 : i32
    %c0_i32 = arith.constant 0 : i32
    %2 = arith.minsi %1, %c0_i32 : i32
    %c0_i32_0 = arith.constant 0 : i32
    %c0_i32_1 = arith.constant 0 : i32
    return %2, %c0_i32_0 : i32, i32
  }
  func.func @transform_2(%arg0: i32, %arg1: i32) -> (i32, i32) {
    %c0_i32 = arith.constant 0 : i32
    %c0_i32_0 = arith.constant 0 : i32
    %c0_i32_1 = arith.constant 0 : i32
    return %c0_i32, %c0_i32_0 : i32, i32
  }
  func.func @transform_3(%arg0: i32, %arg1: i32) -> (i32, i32) {
    %c0_i32 = arith.constant 0 : i32
    %c0_i32_0 = arith.constant 0 : i32
    return %arg0, %c0_i32 : i32, i32
  }
}

</mosaic_0001>

<bundles_post_ra>
// kernel: linear_base_forward.1
= control target key start
LH: loop header
LB: loop body
LE: loop exit
PB: predicated region body
PF: predicated region fallthrough
CT: control target
= control target key end

     0   :  { %s529_s12 = smov 0   ;;  %s531_s13 = smov 0   ;;  %s580_s0 = inlined_call_operand.vmem [shape: f32[8,8], index: 0, kind: input, shape index: {}]   ;;  %s581_s1 = inlined_call_operand.vmem [shape: f32[8,8], index: 1, kind: input, shape index: {}]   ;;  %s582_s2 = inlined_call_operand.vmem [shape: f32[8,8], index: 2, kind: input, shape index: {}]   ;;  %s583_s3 = inlined_call_operand.vmem [shape: f32[16,128], index: 3, kind: output, shape index: {}]  }
   0x1   :  { %s533_s14 = smov 0  }
   0x2 LB: > { %s25_s15 = sadd.s32 1, %s501_s13  ;;  %p434_p0 = scmp.ge.s32.totalorder %s505_s14, 1  ;;  %s505_s14 = sphi %s533_s14, %s13_s14   ;;  %s501_s13 = sphi %s531_s13, %s585_s13   ;;  %s497_s12 = sphi %s529_s12, %s584_s12  }
   0x3   : > { %p27_p1 = scmp.ge.s32.totalorder %s25_s15, 2  ;;  %p181_p2 = scmp.lt.s32.totalorder %s505_s14, 3 }
   0x5   : > { %s587_s15 = smov (%p27_p1, %s25_s15), 0  ;;  %p182_p3 = pnand %p434_p0, %p181_p2 }
   0x6   : > { %p214_p4 = scmp.lt.s32.totalorder (!%p182_p3), %s497_s12, 0  ;;  %s445_s23 = sshll.u32 (!%p182_p3), %s497_s12, 3 }
   0x7   : > { %185 = sbr.rel (%p182_p3) target bundleno = 442 (0x1ba), region = 32  ;;  %p233_p5 = scmp.lt.s32.totalorder (!%p182_p3), %s497_s12, 1 }
   0xc   : > { %v245_v0 = vld [vmem:[%s582_s2] sm:$0xff]  ;;  %v507_v1 = vmov 0.0   ;;  %vm508_vm0 = vmmov 0   ;;  %s215_s18 = scalar_select %p214_p4, %s497_s12, 0  ;;  %vm246_vm1 = vcmask 64512   ;;  %vm242_vm2 = vcmask 57344  }
   0xd   : > { %450 = vmatprep.subr.mxu0 %v507_v1  ;;  %452 = vmatprep.mubr.msk.f32.mxu0 %vm508_vm0, %v507_v1  ;;  %243 = vst.msk [vmem:[#allocation2] sm:$0x1] %vm242_vm2, %v507_v1  ;;  %v322_v3 = vlaneseq  ;;  %v325_v5 = vstv %s445_s23  ;;  %s591_s12 = smov (!%p233_p5, %s497_s12), 1 }
   0xe   : > { %451 = vmatpush3.msra.mxu0 %v245_v0  ;;  %s589_s18 = smov (!%p214_p4, %s215_s18), 0  ;;  %s443_s27 = sshll.u32 %s591_s12, 3 }
   0xf   : > { %s438_s19 = sshll.u32 %s589_s18, 3  ;;  %v323_v4 = vshrl.u32 %v322_v3, 7  ;;  %s236_s30 = scalar_lea.vmem %s583_s3, %s443_s27 }
  0x10   : > { %s219_s22 = scalar_lea.vmem %s580_s0, %s438_s19  ;;  %s229_s26 = scalar_lea.vmem %s581_s1, %s438_s19 }
  0x11   : > { %v244_v2 = vld [vmem:[%s219_s22] sm:$0xff]  ;;  %v326_v7 = vadd.s32 %v325_v5, %v323_v4 }
  0x12   : > { %453 = vmatmul.mubr.msk.f32.vlgmr.msra.gmra.mxu0 %vm246_vm1, %v244_v2  ;;  %v320_v6 = vld [vmem:[%s229_s26] sm:$0xff] }
  0x13   : > { %vm327_vm3 = vcmp.lt.s32.totalorder %v326_v7, 7 }
  0x14   : > { %v330_v19 = vld [vmem:[#allocation2] sm:$0x1] }
  0xd2   : > { %v316_v8 = vpop.f32.mrf.mxu0 }
  0xd3   : > { %v321_v9 = vsub.f32 %v316_v8, %v320_v6 }
  0xd4   : > { %v454_v10 = vpop.f32.mrf.mxu0 }
  0xd5   : > { %v328_v11 = vmul.f32 %v321_v9, %v321_v9 }
  0xd7   : > { %v329_v12 = vsel %vm327_vm3, %v328_v11, 0.0 }
  0xd8   : > { %v331_v13 = vsel %vm246_vm1, %v329_v12, 0.0 }
  0xd9   : > { %v332_v14 = vrot.slane %v331_v13, 4 }
  0xdb   : > { %v333_v15 = vadd.f32 %v332_v14, %v331_v13 }
  0xdd   : > { %v334_v16 = vrot.slane %v333_v15, 2 }
  0xdf   : > { %v335_v17 = vadd.f32 %v334_v16, %v333_v15 }
  0xe1   : > { %v336_v18 = vrot.slane %v335_v17, 1 }
  0xe3   : > { %v337_v20 = vadd.f32 %v336_v18, %v335_v17 }
  0xe5   : > { %v338_v21 = vadd.f32 %v337_v20, %v330_v19 }
  0xe7   : > { %340 = vst.msk [vmem:[#allocation2] sm:$0x1] %vm242_vm2, %v338_v21 }
  0xee   : > { %v344_v22 = vld [vmem:[#allocation2] sm:$0x1] }
  0xef   : > { %v345_v23 = vsel %vm242_vm2, %v344_v22, 0.0 }
  0xf0   : > { %346 = vadd.xlane.f32.xlu0 %v345_v23 }
 0x179   : > { %v347_v24 = vpop.xlane.xlu0 %346 }
 0x17a   : > { %v348_v25 = vrot.slane %v347_v24, 4 }
 0x17c   : > { %v349_v26 = vadd.f32 %v348_v25, %v347_v24 }
 0x17e   : > { %v350_v27 = vrot.slane %v349_v26, 2 }
 0x180   : > { %v351_v28 = vadd.f32 %v350_v27, %v349_v26 }
 0x182   : > { %v352_v29 = vrot.slane %v351_v28, 1 }
 0x184   : > { %v353_v30 = vadd.f32 %v352_v29, %v351_v28 }
 0x186   : > { %455 = vpush %v353_v30 }
 0x1b7   : > { %s456_s4 = spop %455 }
 0x1b8   : > { %v355_v31 = vstv %s456_s4 }
 0x1b9   : > { %356 = vst [vmem:[%s236_s30] sm:$0xff] %v355_v31 }
 0x1ba PF: > { %s13_s14 = sadd.s32 1, %s505_s14   ;;  %s584_s12 = smov %s501_s13 }
 0x1bb   : > { %p10_p6 = scmp.ge.s32.totalorder %s13_s14, 4   ;;  %s585_s13 = smov %s587_s15 }
 0x1bd   :  { %12 = sbr.rel (!%p10_p6) target bundleno = 2 (0x2), region = 73 }

</bundles_post_ra>
